<compile_context>
chip_gen: v7x
topology: tpu7x:2x2x1
jax: 0.10.0
libtpu: 0.0.40
codegen_flags: <defaults>
</compile_context>

<pallas_src>
import functools

import jax
import jax.numpy as jnp
import numpy as np
from jax.experimental import pallas as pl
from jax.experimental.pallas import tpu as pltpu


# ----------------------------------------------------------------------------
# Parameter init (mirrors layer_init: orthogonal weight * std, constant bias)
# ----------------------------------------------------------------------------
def _orthogonal(key, out_dim, in_dim, gain):
    """Deterministic orthogonal init matching torch.nn.init.orthogonal_ semantics."""
    rows, cols = out_dim, in_dim
    transpose = rows < cols
    if transpose:
        rows, cols = cols, rows
    a = jax.random.normal(key, (rows, cols), dtype=jnp.float32)
    q, r = jnp.linalg.qr(a)
    d = jnp.sign(jnp.diagonal(r))
    d = jnp.where(d == 0, jnp.ones_like(d), d)   # guard against zero diagonal
    q = q * d[None, :]
    if transpose:
        q = q.T
    return (gain * q).astype(jnp.float32)        # shape (out_dim, in_dim)


def init_reward_predictor_params(key, obs_dim, hidden=64):
    k1, k2, k3 = jax.random.split(key, 3)
    std = float(np.sqrt(2.0))
    # torch Linear weight is (out, in); store as (in, out) for x @ W math.
    w1 = _orthogonal(k1, hidden, obs_dim, std).T     # (obs_dim, 64)
    b1 = jnp.zeros((hidden,), jnp.float32)
    w2 = _orthogonal(k2, hidden, hidden, std).T      # (64, 64)
    b2 = jnp.zeros((hidden,), jnp.float32)
    w3 = _orthogonal(k3, 1, hidden, std).T           # (64, 1)
    b3 = jnp.zeros((1,), jnp.float32)
    return (w1, b1, w2, b2, w3, b3)


# ----------------------------------------------------------------------------
# Pallas kernel: full 3-layer MLP on one tile of rows, transposed layout
# ----------------------------------------------------------------------------
def _mlp_kernel(x_ref, w1t_ref, b1_ref, w2t_ref, b2_ref, w3_ref, b3_ref, o_ref):
    # x_ref: (tm, obs_dim) rows-on-sublanes tile of X (possibly bf16).
    x = x_ref[...].astype(jnp.float32)

    # Layer 1, computed transposed:  h1t[m, r] = sum_k W1^T[m, k] * x[r, k]
    # -> (64, tm): features on sublanes, rows on lanes (lane-dense).
    s1 = jax.lax.dot_general(
        w1t_ref[...], x, (((1,), (1,)), ((), ())),
        preferred_element_type=jnp.float32)
    h1 = jnp.tanh(s1 + b1_ref[...])                          # bias (64, 1)

    # Layer 2: (64, 64) @ (64, tm) -> (64, tm)
    h2 = jnp.tanh(
        jnp.dot(w2t_ref[...], h1, preferred_element_type=jnp.float32)
        + b2_ref[...])

    # Layer 3: out[r] = sum_k w3[k] * h2t[k, r] + b3  -> (1, tm)
    out = jnp.sum(h2 * w3_ref[...], axis=0, keepdims=True) + b3_ref[...]

    o_ref[...] = out.astype(o_ref.dtype)                     # lane-dense store


@functools.partial(jax.jit, static_argnames=("row_tile", "stream_dtype"))
def reward_predictor_forward(x, params, *, row_tile=1024,
                             stream_dtype=jnp.bfloat16):
    """x: (batch, seq, obs_dim) -> (batch, seq, 1) float32."""
    w1, b1, w2, b2, w3, b3 = params           # w: (in, out), b: (out,)
    batch, seq, obs_dim = x.shape
    hidden = w1.shape[1]
    n = batch * seq

    assert row_tile % 128 == 0, "row_tile must be a multiple of 128 (lane width)"
    # Small inputs: one exact block covering all rows (block == full dim is a
    # legal block shape).  Large inputs: row_tile rows per step; a ragged tail
    # block is handled by Pallas' masked OOB reads/writes -- we never
    # materialise a padded copy of X in HBM.
    tm = n if n <= row_tile else row_tile
    grid = (pl.cdiv(n, tm),)

    x2d = x.reshape(n, obs_dim)
    if stream_dtype is not None and x2d.dtype != stream_dtype:
        # Halves the dominant HBM traffic (pays off when X is produced in bf16
        # upstream / the cast fuses with the producer).  Pass stream_dtype=None
        # to stream X in its original dtype.
        x2d = x2d.astype(stream_dtype)

    # Weights stay f32 (VMEM-resident, ~21 KB); kernel wants them transposed.
    w1t = w1.T.astype(jnp.float32)                       # (hidden, obs_dim)
    b1c = b1.reshape(hidden, 1).astype(jnp.float32)
    w2t = w2.T.astype(jnp.float32)                       # (hidden, hidden)
    b2c = b2.reshape(hidden, 1).astype(jnp.float32)
    w3c = w3.reshape(hidden, 1).astype(jnp.float32)      # (hidden, 1)
    b3c = b3.reshape(1, 1).astype(jnp.float32)

    const = lambda shape: pl.BlockSpec(shape, lambda i: (0, 0))   # resident

    out = pl.pallas_call(
        _mlp_kernel,
        out_shape=jax.ShapeDtypeStruct((1, n), jnp.float32),
        grid_spec=pltpu.PrefetchScalarGridSpec(
            num_scalar_prefetch=0,
            grid=grid,
            in_specs=[
                pl.BlockSpec((tm, obs_dim), lambda i: (i, 0)),    # X tile
                const((hidden, obs_dim)),                         # W1^T
                const((hidden, 1)),                               # b1
                const((hidden, hidden)),                          # W2^T
                const((hidden, 1)),                               # b2
                const((hidden, 1)),                               # w3 column
                const((1, 1)),                                    # b3
            ],
            # Lane-dense output: (1, tm) block with rows on the lane axis.
            out_specs=pl.BlockSpec((1, tm), lambda i: (0, i)),
        ),
        compiler_params=pltpu.CompilerParams(
            dimension_semantics=("parallel",),   # v7x: row tiles split over 2 TCs
        ),
    )(x2d, w1t, b1c, w2t, b2c, w3c, b3c)

    return out.reshape(batch, seq, 1)


# ----------------------------------------------------------------------------
# Reference (plain JAX) for sanity check
# ----------------------------------------------------------------------------
def reward_predictor_ref(x, params, stream_dtype=None):
    w1, b1, w2, b2, w3, b3 = params
    b, s, d = x.shape
    h = x.reshape(-1, d).astype(jnp.float32)
    if stream_dtype is not None:
        h = h.astype(stream_dtype).astype(jnp.float32)
    h = jnp.tanh(h @ w1 + b1)
    h = jnp.tanh(h @ w2 + b2)
    h = h @ w3 + b3
    return h.reshape(b, s, 1)


if __name__ == "__main__":
    key = jax.random.PRNGKey(0)
    k_param, k_x1, k_x2 = jax.random.split(key, 3)

    # 1) Small MuJoCo-like shapes, default path (bf16-streamed X, 1 grid step).
    batch, seq, obs_dim = 2, 8, 16
    params = init_reward_predictor_params(k_param, obs_dim)
    x = jax.random.normal(k_x1, (batch, seq, obs_dim), dtype=jnp.float32)

    out = jax.block_until_ready(reward_predictor_forward(x, params))
    assert out.shape == (batch, seq, 1), out.shape
    ref = reward_predictor_ref(x, params, stream_dtype=jnp.bfloat16)
    np.testing.assert_allclose(np.asarray(out), np.asarray(ref),
                               rtol=5e-2, atol=5e-2)

    # 2) f32-streaming path on a shape that exercises multiple grid steps
    #    (n = 256 rows, row_tile = 128 -> 2 lane-dense output tiles).
    batch2, seq2, obs_dim2 = 4, 64, 24
    params2 = init_reward_predictor_params(k_param, obs_dim2)
    x2 = jax.random.normal(k_x2, (batch2, seq2, obs_dim2), dtype=jnp.float32)
    out2 = jax.block_until_ready(
        reward_predictor_forward(x2, params2, row_tile=128, stream_dtype=None))
    assert out2.shape == (batch2, seq2, 1), out2.shape
    ref2 = reward_predictor_ref(x2, params2)
    np.testing.assert_allclose(np.asarray(out2), np.asarray(ref2),
                               rtol=5e-2, atol=5e-2)

    print("KERNEL_OK")
</pallas_src>

<mosaic_0001>
module attributes {stable_mosaic.version = 11 : i64} {
  func.func @_mlp_kernel(%arg0: i32, %arg1: memref<16x16xbf16, #tpu.memory_space<vmem>>, %arg2: memref<64x16xf32, #tpu.memory_space<vmem>>, %arg3: memref<64x1xf32, #tpu.memory_space<vmem>>, %arg4: memref<64x64xf32, #tpu.memory_space<vmem>>, %arg5: memref<64x1xf32, #tpu.memory_space<vmem>>, %arg6: memref<64x1xf32, #tpu.memory_space<vmem>>, %arg7: memref<1x1xf32, #tpu.memory_space<vmem>>, %arg8: memref<1x16xf32, #tpu.memory_space<vmem>>) attributes {dimension_semantics = [#tpu.dimension_semantics<parallel>], iteration_bounds = array<i64: 1>, scalar_prefetch = 0 : i64, scratch_operands = 0 : i64, tpu.core_type = #tpu.core_type<tc>, window_params = [{transform_indices = @transform_0, window_bounds = array<i64: 16, 16>}, {pipeline_mode = #tpu.pipeline_mode<synchronous>, transform_indices = @transform_1, window_bounds = array<i64: 64, 16>}, {pipeline_mode = #tpu.pipeline_mode<synchronous>, transform_indices = @transform_2, window_bounds = array<i64: 64, 1>}, {pipeline_mode = #tpu.pipeline_mode<synchronous>, transform_indices = @transform_3, window_bounds = array<i64: 64, 64>}, {pipeline_mode = #tpu.pipeline_mode<synchronous>, transform_indices = @transform_4, window_bounds = array<i64: 64, 1>}, {pipeline_mode = #tpu.pipeline_mode<synchronous>, transform_indices = @transform_5, window_bounds = array<i64: 64, 1>}, {pipeline_mode = #tpu.pipeline_mode<synchronous>, transform_indices = @transform_6, window_bounds = array<i64: 1, 1>}, {transform_indices = @transform_7, window_bounds = array<i64: 1, 16>}]} {
    %c0 = arith.constant 0 : index
    %c0_0 = arith.constant 0 : index
    %0 = vector.load %arg1[%c0, %c0_0] : memref<16x16xbf16, #tpu.memory_space<vmem>>, vector<16x16xbf16>
    %1 = arith.extf %0 : vector<16x16xbf16> to vector<16x16xf32>
    %c0_1 = arith.constant 0 : index
    %c0_2 = arith.constant 0 : index
    %2 = vector.load %arg2[%c0_1, %c0_2] : memref<64x16xf32, #tpu.memory_space<vmem>>, vector<64x16xf32>
    %cst = arith.constant dense<0.000000e+00> : vector<64x16xf32>
    %3 = tpu.matmul %2, %1, %cst {dimension_numbers = #tpu.dot_dimension_numbers<[1], [1], [0], [0], [0, 0, 1, 0], [], []>} : vector<64x16xf32>, vector<16x16xf32>, vector<64x16xf32> -> vector<64x16xf32>
    %c0_3 = arith.constant 0 : index
    %c0_4 = arith.constant 0 : index
    %4 = vector.load %arg3[%c0_3, %c0_4] : memref<64x1xf32, #tpu.memory_space<vmem>>, vector<64x1xf32>
    %5 = vector.broadcast %4 : vector<64x1xf32> to vector<64x16xf32>
    %6 = arith.addf %3, %5 : vector<64x16xf32>
    %7 = math.tanh %6 : vector<64x16xf32>
    %c0_5 = arith.constant 0 : index
    %c0_6 = arith.constant 0 : index
    %8 = vector.load %arg4[%c0_5, %c0_6] : memref<64x64xf32, #tpu.memory_space<vmem>>, vector<64x64xf32>
    %cst_7 = arith.constant dense<0.000000e+00> : vector<64x16xf32>
    %9 = tpu.matmul %8, %7, %cst_7 {dimension_numbers = #tpu.dot_dimension_numbers<[1], [0], [0], [1], [0, 0, 1, 1], [], []>} : vector<64x64xf32>, vector<64x16xf32>, vector<64x16xf32> -> vector<64x16xf32>
    %c0_8 = arith.constant 0 : index
    %c0_9 = arith.constant 0 : index
    %10 = vector.load %arg5[%c0_8, %c0_9] : memref<64x1xf32, #tpu.memory_space<vmem>>, vector<64x1xf32>
    %11 = vector.broadcast %10 : vector<64x1xf32> to vector<64x16xf32>
    %12 = arith.addf %9, %11 : vector<64x16xf32>
    %13 = math.tanh %12 : vector<64x16xf32>
    %c0_10 = arith.constant 0 : index
    %c0_11 = arith.constant 0 : index
    %14 = vector.load %arg6[%c0_10, %c0_11] : memref<64x1xf32, #tpu.memory_space<vmem>>, vector<64x1xf32>
    %15 = vector.broadcast %14 : vector<64x1xf32> to vector<64x16xf32>
    %16 = arith.mulf %13, %15 : vector<64x16xf32>
    %cst_12 = arith.constant dense<0.000000e+00> : vector<16xf32>
    %17 = vector.multi_reduction <add>, %16, %cst_12 [0] : vector<64x16xf32> to vector<16xf32>
    %18 = vector.shape_cast %17 : vector<16xf32> to vector<1x16xf32>
    %c0_13 = arith.constant 0 : index
    %c0_14 = arith.constant 0 : index
    %19 = vector.load %arg7[%c0_13, %c0_14] : memref<1x1xf32, #tpu.memory_space<vmem>>, vector<1x1xf32>
    %20 = vector.broadcast %19 : vector<1x1xf32> to vector<1x16xf32>
    %21 = arith.addf %18, %20 : vector<1x16xf32>
    %c0_15 = arith.constant 0 : index
    %c0_16 = arith.constant 0 : index
    %22 = vector.load %arg8[%c0_15, %c0_16] : memref<1x16xf32, #tpu.memory_space<vmem>>, vector<1x16xf32>
    tpu.vector_store %arg8[%c0_15, %c0_16], %21 {strides = array<i32>} : memref<1x16xf32, #tpu.memory_space<vmem>>, vector<1x16xf32>,
    return
  }
  func.func @transform_0(%arg0: i32) -> (i32, i32) {
    %c0_i32 = arith.constant 0 : i32
    %c0_i32_0 = arith.constant 0 : i32
    return %arg0, %c0_i32 : i32, i32
  }
  func.func @transform_1(%arg0: i32) -> (i32, i32) {
    %c0_i32 = arith.constant 0 : i32
    %c0_i32_0 = arith.constant 0 : i32
    %c0_i32_1 = arith.constant 0 : i32
    return %c0_i32, %c0_i32_0 : i32, i32
  }
  func.func @transform_2(%arg0: i32) -> (i32, i32) {
    %c0_i32 = arith.constant 0 : i32
    %c0_i32_0 = arith.constant 0 : i32
    %c0_i32_1 = arith.constant 0 : i32
    return %c0_i32, %c0_i32_0 : i32, i32
  }
  func.func @transform_3(%arg0: i32) -> (i32, i32) {
    %c0_i32 = arith.constant 0 : i32
    %c0_i32_0 = arith.constant 0 : i32
    %c0_i32_1 = arith.constant 0 : i32
    return %c0_i32, %c0_i32_0 : i32, i32
  }
  func.func @transform_4(%arg0: i32) -> (i32, i32) {
    %c0_i32 = arith.constant 0 : i32
    %c0_i32_0 = arith.constant 0 : i32
    %c0_i32_1 = arith.constant 0 : i32
    return %c0_i32, %c0_i32_0 : i32, i32
  }
  func.func @transform_5(%arg0: i32) -> (i32, i32) {
    %c0_i32 = arith.constant 0 : i32
    %c0_i32_0 = arith.constant 0 : i32
    %c0_i32_1 = arith.constant 0 : i32
    return %c0_i32, %c0_i32_0 : i32, i32
  }
  func.func @transform_6(%arg0: i32) -> (i32, i32) {
    %c0_i32 = arith.constant 0 : i32
    %c0_i32_0 = arith.constant 0 : i32
    %c0_i32_1 = arith.constant 0 : i32
    return %c0_i32, %c0_i32_0 : i32, i32
  }
  func.func @transform_7(%arg0: i32) -> (i32, i32) {
    %c0_i32 = arith.constant 0 : i32
    %c0_i32_0 = arith.constant 0 : i32
    return %c0_i32, %arg0 : i32, i32
  }
}

</mosaic_0001>

<bundles_post_ra>
// kernel: reward_predictor_forward.1
= control target key start
LH: loop header
LB: loop body
LE: loop exit
PB: predicated region body
PF: predicated region fallthrough
CT: control target
= control target key end

     0   :  { %vm88_vm0 = vcmask 130048   ;;  %v677_v2 = vmov 0   ;;  %vm288_vm2 = vcmask 523264   ;;  %vm514_vm3 = vcmask 122880   ;;  %s873_s0 = inlined_call_operand.vmem [shape: bf16[16,16], index: 0, kind: input, shape index: {}]   ;;  %s874_s1 = inlined_call_operand.vmem [shape: f32[64,16], index: 1, kind: input, shape index: {}]   ;;  %s875_s6 = inlined_call_operand.<no memory space> [shape: f32[1,1], index: 6, kind: input, shape index: {}]   ;;  %s876_s2 = inlined_call_operand.vmem [shape: f32[64,1], index: 2, kind: input, shape index: {}]   ;;  %s877_s4 = inlined_call_operand.vmem [shape: f32[64,1], index: 4, kind: input, shape index: {}]   ;;  %s878_s5 = inlined_call_operand.vmem [shape: f32[64,1], index: 5, kind: input, shape index: {}]   ;;  %s879_s3 = inlined_call_operand.vmem [shape: f32[64,64], index: 3, kind: input, shape index: {}]   ;;  %s880_s7 = inlined_call_operand.vmem [shape: f32[1,16], index: 7, kind: output, shape index: {}]  }
   0x1   :  { %v539_v0 = vld [vmem:[%s873_s0] sm:$0xff]   ;;  %vm613_vm1 = vmpackc.low %vm88_vm0, %vm88_vm0  ;;  %643 = vset.pattern.permute.xlu0 %v677_v2  ;;  %644 = vset.pattern.permute.xlu1 %v677_v2  ;;  %v12_v3 = vstv %s875_s6  ;;  %v42_v5 = vld [vmem:[%s876_s2 + $0x10] sm:$0xff] }
   0x2   :  { %v32_v1 = vld [vmem:[%s874_s1] sm:$0xff]  ;;  %614 = vmatprep.subr.msk.bf16.mxu0 %vm613_vm1, %v539_v0  ;;  %13 = vst [vmem:[#allocation2] sm:$0x1] %v12_v3  ;;  %v41_v6 = vld [vmem:[%s876_s2 + $0x8] sm:$0xff]  ;;  %60 = vperm.xlu1 %644, %v42_v5   ;;  %v43_v8 = vld [vmem:[%s876_s2 + $0x18] sm:$0xff] }
   0x3   :  { %572 = vmatprep.mubr.msk.f32.mxu0 %vm88_vm0, %v32_v1  ;;  %617 = vmatpush3.bf16.xpose.msk.msra.mxu0 %vm613_vm1, %v539_v0  ;;  %v40_v4 = vld [vmem:[%s876_s2] sm:$0xff]  ;;  %v33_v7 = vld [vmem:[%s874_s1 + $0x8] sm:$0xff]  ;;  %v34_v9 = vld [vmem:[%s874_s1 + $0x10] sm:$0xff] }
   0x4   :  { %50 = vperm.xlu0 %643, %v40_v4   ;;  %v44_v10 = vld [vmem:[%s876_s2 + $0x20] sm:$0xff]  ;;  %v35_v11 = vld [vmem:[%s874_s1 + $0x18] sm:$0xff]  ;;  %v45_v12 = vld [vmem:[%s876_s2 + $0x28] sm:$0xff] }
   0x5   :  { %v36_v13 = vld [vmem:[%s874_s1 + $0x20] sm:$0xff]  ;;  %v46_v14 = vld [vmem:[%s876_s2 + $0x30] sm:$0xff]  ;;  %v37_v15 = vld [vmem:[%s874_s1 + $0x28] sm:$0xff] }
   0x6   :  { %65 = vperm.xlu1 %644, %v43_v8   ;;  %v47_v16 = vld [vmem:[%s876_s2 + $0x38] sm:$0xff]  ;;  %v38_v17 = vld [vmem:[%s874_s1 + $0x30] sm:$0xff]  ;;  %v240_v18 = vld [vmem:[%s877_s4] sm:$0xff] }
   0x7   :  { %v39_v19 = vld [vmem:[%s874_s1 + $0x38] sm:$0xff]  ;;  %v241_v20 = vld [vmem:[%s877_s4 + $0x8] sm:$0xff]  ;;  %v242_v21 = vld [vmem:[%s877_s4 + $0x10] sm:$0xff] }
   0x8   :  { %55 = vperm.xlu0 %643, %v41_v6   ;;  %v243_v22 = vld [vmem:[%s877_s4 + $0x18] sm:$0xff]  ;;  %v244_v23 = vld [vmem:[%s877_s4 + $0x20] sm:$0xff]  ;;  %v245_v24 = vld [vmem:[%s877_s4 + $0x28] sm:$0xff] }
   0x9   :  { %v246_v25 = vld [vmem:[%s877_s4 + $0x30] sm:$0xff]  ;;  %v247_v26 = vld [vmem:[%s877_s4 + $0x38] sm:$0xff]  ;;  %v426_v27 = vld [vmem:[%s878_s5] sm:$0xff] }
   0xa   :  { %573 = vmatmul.mubr.msk.f32.vlgmr.msra.gmra.mrb[0].mxu0 %vm88_vm0, %v33_v7  ;;  %75 = vperm.xlu1 %644, %v45_v12   ;;  %v427_v28 = vld [vmem:[%s878_s5 + $0x8] sm:$0xff]  ;;  %v428_v29 = vld [vmem:[%s878_s5 + $0x10] sm:$0xff]  ;;  %v429_v30 = vld [vmem:[%s878_s5 + $0x18] sm:$0xff] }
   0xb   :  { %575 = vmatprep.mubr.msk.f32.mxu0 %vm88_vm0, %v34_v9  ;;  %v430_v31 = vld [vmem:[%s878_s5 + $0x20] sm:$0xff]  ;;  %v431_v32 = vld [vmem:[%s878_s5 + $0x28] sm:$0xff]  ;;  %v432_v33 = vld [vmem:[%s878_s5 + $0x30] sm:$0xff] }
   0xc   :  { %70 = vperm.xlu0 %643, %v44_v10   ;;  %v433_v34 = vld [vmem:[%s878_s5 + $0x38] sm:$0xff]  ;;  %v503_v35 = vld [vmem:[#allocation2] sm:$0x1]  ;;  %v234_v37 = vld [vmem:[%s879_s3 + $0x10] sm:$0xff] }
   0xd   :  { %v232_v36 = vld [vmem:[%s879_s3] sm:$0xff]  ;;  %603 = vmatprep.mubr.msk.f32.mxu1 %vm288_vm2, %v234_v37  ;;  %v233_v10 = vld [vmem:[%s879_s3 + $0x8] sm:$0xff] }
   0xe   :  { %576 = vmatmul.mubr.msk.f32.gmra.mrb[2].mxu0 %vm88_vm0, %v35_v11  ;;  %85 = vperm.xlu1 %644, %v47_v16   ;;  %v235_v11 = vld [vmem:[%s879_s3 + $0x18] sm:$0xff]  ;;  %v236_v12 = vld [vmem:[%s879_s3 + $0x20] sm:$0xff] }
   0xf   :  { %578 = vmatprep.mubr.msk.f32.mxu0 %vm88_vm0, %v36_v13  ;;  %v237_v13 = vld [vmem:[%s879_s3 + $0x28] sm:$0xff] }
  0x10   :  { %80 = vperm.xlu0 %643, %v46_v14   ;;  %v238_v14 = vld [vmem:[%s879_s3 + $0x30] sm:$0xff] }
  0x12   :  { %579 = vmatmul.mubr.msk.f32.gmra.mrb[4].mxu0 %vm88_vm0, %v37_v15  ;;  %255 = vperm.xlu1 %644, %v241_v20   ;;  %v239_v15 = vld [vmem:[%s879_s3 + $0x38] sm:$0xff] }
  0x13   :  { %581 = vmatprep.mubr.msk.f32.mxu0 %vm88_vm0, %v38_v17 }
  0x14   :  { %250 = vperm.xlu0 %643, %v240_v18  }
  0x16   :  { %582 = vmatmul.mubr.msk.f32.gmra.mrb[6].mxu0 %vm88_vm0, %v39_v19  ;;  %265 = vperm.xlu1 %644, %v243_v22  }
  0x17   :  { %600 = vmatprep.mubr.msk.f32.mxu0 %vm288_vm2, %v232_v36 }
  0x18   :  { %260 = vperm.xlu0 %643, %v242_v21  }
  0x1a   :  { %275 = vperm.xlu1 %644, %v245_v24  }
  0x1c   :  { %270 = vperm.xlu0 %643, %v244_v23  }
  0x1e   :  { %285 = vperm.xlu1 %644, %v247_v26  }
  0x20   :  { %280 = vperm.xlu0 %643, %v246_v25  }
  0x22   :  { %441 = vperm.xlu1 %644, %v427_v28  }
  0x24   :  { %436 = vperm.xlu0 %643, %v426_v27  }
  0x26   :  { %451 = vperm.xlu1 %644, %v429_v30  }
  0x28   :  { %446 = vperm.xlu0 %643, %v428_v29  }
  0x2a   :  { %461 = vperm.xlu1 %644, %v431_v32  }
  0x2c   :  { %456 = vperm.xlu0 %643, %v430_v31  }
  0x2e   :  { %471 = vperm.xlu1 %644, %v433_v34  }
  0x30   :  { %466 = vperm.xlu0 %643, %v432_v33  }
  0x34   :  { %506 = vperm.xlu0 %643, %v503_v35  }
  0x81   :  { %v61_v39 = vpop.permute.xlu1 %60 }
  0x83   :  { %v51_v38 = vpop.permute.xlu0 %50 }
  0x85   :  { %v66_v41 = vpop.permute.xlu1 %65 }
  0x87   :  { %v56_v40 = vpop.permute.xlu0 %55 }
  0x89   :  { %v76_v49 = vpop.permute.xlu1 %75 }
  0x8b   :  { %v71_v51 = vpop.permute.xlu0 %70 }
  0x8d   :  { %v86_v56 = vpop.permute.xlu1 %85 }
  0x8f   :  { %v81_v59 = vpop.permute.xlu0 %80 }
  0x91   :  { %v256_v17 = vpop.permute.xlu1 %255 }
  0x93   :  { %v251_v16 = vpop.permute.xlu0 %250 }
  0x95   :  { %v266_v19 = vpop.permute.xlu1 %265 }
  0x97   :  { %v261_v18 = vpop.permute.xlu0 %260 }
  0x99   :  { %v276_v21 = vpop.permute.xlu1 %275 }
  0x9b   :  { %v271_v20 = vpop.permute.xlu0 %270 }
  0x9d   :  { %v286_v23 = vpop.permute.xlu1 %285 }
  0x9f   :  { %v281_v22 = vpop.permute.xlu0 %280 }
  0xa1   :  { %v442_v37 = vpop.permute.xlu1 %441 }
  0xa3   :  { %v437_v33 = vpop.permute.xlu0 %436 }
  0xdd   :  { %v574_v42 = vpop.f32.mrb[0].mxu0 }
  0xde   :  { %v191_v43 = vadd.f32 %v574_v42, %v56_v40  ;;  %v185_v44 = vpop.f32.mrb[1].mxu0  ;;  %v447_v42 = vpop.permute.xlu0 %446 }
  0xdf   :  { %v186_v45 = vadd.f32 %v185_v44, %v51_v38  ;;  %v452_v44 = vpop.permute.xlu1 %451 }
  0xe0   :  { %645 = vtanh.f32 %v191_v43 }
  0xe1   :  { %647 = vtanh.f32 %v186_v45  ;;  %v577_v46 = vpop.f32.mrb[2].mxu0 }
  0xe2   :  { %v201_v47 = vadd.f32 %v577_v46, %v66_v41  ;;  %v195_v48 = vpop.f32.mrb[3].mxu0 }
  0xe3   :  { %v196_v50 = vadd.f32 %v195_v48, %v61_v39 }
  0xe4   :  { %649 = vtanh.f32 %v201_v47 }
  0xe5   :  { %651 = vtanh.f32 %v196_v50  ;;  %v580_v52 = vpop.f32.mrb[4].mxu0 }
  0xe6   :  { %v211_v53 = vadd.f32 %v580_v52, %v76_v49  ;;  %v205_v54 = vpop.f32.mrb[5].mxu0 }
  0xe7   :  { %v206_v55 = vadd.f32 %v205_v54, %v71_v51  ;;  %v457_v51 = vpop.permute.xlu0 %456 }
  0xe8   :  { %653 = vtanh.f32 %v211_v53 }
  0xe9   :  { %655 = vtanh.f32 %v206_v55  ;;  %v583_v57 = vpop.f32.mrb[6].mxu0 }
  0xea   :  { %v646_v58 = vpop.eup %645  ;;  %v221_v60 = vadd.f32 %v583_v57, %v86_v56  ;;  %v215_v61 = vpop.f32.mrb[7].mxu0 }
  0xeb   :  { %v648_v62 = vpop.eup %647  ;;  %v216_v63 = vadd.f32 %v215_v61, %v81_v59  ;;  %v462_v57 = vpop.permute.xlu1 %461 }
  0xec   :  { %657 = vtanh.f32 %v221_v60  ;;  %v618_v0 = vpack.c.bf16 %v646_v58, %v648_v62 }
  0xed   :  { %659 = vtanh.f32 %v216_v63 }
  0xee   :  { %v650_v1 = vpop.eup %649  ;;  %619 = vmatprep.subr.bf16.mxu0 %v618_v0  ;;  %634 = vmatprep.subr.bf16.mxu1 %v618_v0 }
  0xef   :  { %v652_v2 = vpop.eup %651  ;;  %621 = vmatpush3.bf16.msra.mxu0 %v618_v0  ;;  %638 = vmatpush3.bf16.msra.mxu1 %v618_v0 }
  0xf0   :  { %v622_v3 = vpack.c.bf16 %v650_v1, %v652_v2  ;;  %v467_v2 = vpop.permute.xlu0 %466 }
  0xf2   :  { %v654_v4 = vpop.eup %653  ;;  %623 = vmatprep.subr.bf16.mxu0 %v622_v3  ;;  %635 = vmatprep.subr.bf16.mxu1 %v622_v3 }
  0xf3   :  { %v656_v5 = vpop.eup %655  ;;  %625 = vmatpush3.bf16.msra.mxu0 %v622_v3  ;;  %639 = vmatpush3.bf16.msra.mxu1 %v622_v3 }
  0xf4   :  { %v626_v6 = vpack.c.bf16 %v654_v4, %v656_v5 }
  0xf6   :  { %v658_v7 = vpop.eup %657  ;;  %627 = vmatprep.subr.bf16.mxu0 %v626_v6  ;;  %636 = vmatprep.subr.bf16.mxu1 %v626_v6 }
  0xf7   :  { %v660_v8 = vpop.eup %659  ;;  %629 = vmatpush3.bf16.msra.mxu0 %v626_v6  ;;  %640 = vmatpush3.bf16.msra.mxu1 %v626_v6  ;;  %v472_v6 = vpop.permute.xlu1 %471 }
  0xf8   :  { %v630_v9 = vpack.c.bf16 %v658_v7, %v660_v8 }
  0xfa   :  { %631 = vmatprep.subr.bf16.mxu0 %v630_v9  ;;  %637 = vmatprep.subr.bf16.mxu1 %v630_v9 }
  0xfb   :  { %633 = vmatpush3.bf16.msra.mxu0 %v630_v9  ;;  %641 = vmatpush3.bf16.msra.mxu1 %v630_v9 }
  0xfe   :  { %601 = vmatmul.mubr.msk.f32.vlgmr.msra.gmra.mrb[8].mxu0 %vm288_vm2, %v233_v10  ;;  %604 = vmatmul.mubr.msk.f32.vlgmr.msra.gmra.mrb[0].mxu1 %vm288_vm2, %v235_v11 }
  0xff   :  { %606 = vmatprep.mubr.msk.f32.mxu1 %vm288_vm2, %v236_v12 }
 0x102   :  { %607 = vmatmul.mubr.msk.f32.gmra.mrb[2].mxu1 %vm288_vm2, %v237_v13 }
 0x103   :  { %609 = vmatprep.mubr.msk.f32.mxu1 %vm288_vm2, %v238_v14  ;;  %v509_v14 = vlaneseq }
 0x106   :  { %610 = vmatmul.mubr.msk.f32.gmra.mrb[4].mxu1 %vm288_vm2, %v239_v15 }
 0x1d1   :  { %v602_v24 = vpop.f32.mrb[8].mxu0  ;;  %v605_v25 = vpop.f32.mrb[0].mxu1 }
 0x1d2   :  { %v385_v26 = vadd.f32 %v602_v24, %v256_v17  ;;  %v395_v27 = vadd.f32 %v605_v25, %v266_v19  ;;  %v379_v28 = vpop.f32.mrb[9].mxu0  ;;  %v389_v29 = vpop.f32.mrb[1].mxu1  ;;  %v510_v17 = vshrl.u32 %v509_v14, 7 }
 0x1d3   :  { %v380_v30 = vadd.f32 %v379_v28, %v251_v16  ;;  %v390_v31 = vadd.f32 %v389_v29, %v261_v18 }
 0x1d4   :  { %661 = vtanh.f32 %v385_v26 }
 0x1d5   :  { %663 = vtanh.f32 %v395_v27  ;;  %v608_v32 = vpop.f32.mrb[2].mxu1 }
 0x1d6   :  { %665 = vtanh.f32 %v380_v30  ;;  %v405_v34 = vadd.f32 %v608_v32, %v276_v21  ;;  %v399_v35 = vpop.f32.mrb[3].mxu1 }
 0x1d7   :  { %667 = vtanh.f32 %v390_v31  ;;  %v400_v36 = vadd.f32 %v399_v35, %v271_v20  ;;  %v511_v20 = vsub.s32 0, %v510_v17 }
 0x1d9   :  { %669 = vtanh.f32 %v400_v36  ;;  %v611_v38 = vpop.f32.mrb[4].mxu1 }
 0x1da   :  { %671 = vtanh.f32 %v405_v34  ;;  %v415_v39 = vadd.f32 %v611_v38, %v286_v23  ;;  %v409_v40 = vpop.f32.mrb[5].mxu1 }
 0x1db   :  { %v410_v41 = vadd.f32 %v409_v40, %v281_v22  ;;  %v507_v22 = vpop.permute.xlu0 %506 }
 0x1dc   :  { %v512_v24 = vrot.slane %v507_v22, %v511_v20 }
 0x1dd   :  { %673 = vtanh.f32 %v410_v41 }
 0x1de   :  { %v662_v43 = vpop.eup %661  ;;  %675 = vtanh.f32 %v415_v39 }
 0x1df   :  { %v664_v45 = vpop.eup %663  ;;  %v475_v46 = vmul.f32 %v662_v43, %v442_v37 }
 0x1e0   :  { %v666_v47 = vpop.eup %665  ;;  %v477_v54 = vmul.f32 %v664_v45, %v452_v44 }
 0x1e1   :  { %v668_v48 = vpop.eup %667  ;;  %v483_v49 = vsel %vm88_vm0, %v475_v46, 0.0  ;;  %v474_v50 = vmul.f32 %v666_v47, %v437_v33 }
 0x1e2   :  { %v476_v52 = vmul.f32 %v668_v48, %v447_v42  ;;  %v487_v63 = vsel %vm88_vm0, %v477_v54, 0.0 }
 0x1e3   :  { %v670_v53 = vpop.eup %669  ;;  %v482_v55 = vsel %vm88_vm0, %v474_v50, 0.0 }
 0x1e4   :  { %v672_v56 = vpop.eup %671  ;;  %v484_v58 = vadd.f32 %v483_v49, %v482_v55  ;;  %v485_v59 = vsel %vm88_vm0, %v476_v52, 0.0  ;;  %v478_v60 = vmul.f32 %v670_v53, %v457_v51 }
 0x1e5   :  { %v479_v0 = vmul.f32 %v672_v56, %v462_v57 }
 0x1e6   :  { %v486_v61 = vadd.f32 %v485_v59, %v484_v58  ;;  %v489_v4 = vsel %vm88_vm0, %v478_v60, 0.0 }
 0x1e7   :  { %v674_v62 = vpop.eup %673  ;;  %v491_v8 = vsel %vm88_vm0, %v479_v0, 0.0 }
 0x1e8   :  { %v676_v1 = vpop.eup %675  ;;  %v488_v3 = vadd.f32 %v487_v63, %v486_v61  ;;  %v480_v5 = vmul.f32 %v674_v62, %v467_v2 }
 0x1e9   :  { %v481_v9 = vmul.f32 %v676_v1, %v472_v6 }
 0x1ea   :  { %v490_v7 = vadd.f32 %v489_v4, %v488_v3  ;;  %v493_v11 = vsel %vm88_vm0, %v480_v5, 0.0 }
 0x1eb   :  { %v495_v13 = vsel %vm88_vm0, %v481_v9, 0.0 }
 0x1ec   :  { %v492_v10 = vadd.f32 %v491_v8, %v490_v7 }
 0x1ee   :  { %v494_v12 = vadd.f32 %v493_v11, %v492_v10 }
 0x1f0   :  { %v496_v15 = vadd.f32 %v495_v13, %v494_v12 }
 0x1f2   :  { %v497_v16 = vrot.slane %v496_v15, 4 }
 0x1f4   :  { %v498_v18 = vadd.f32 %v497_v16, %v496_v15 }
 0x1f6   :  { %v499_v19 = vrot.slane %v498_v18, 2 }
 0x1f8   :  { %v500_v21 = vadd.f32 %v499_v19, %v498_v18 }
 0x1fa   :  { %v501_v23 = vrot.slane %v500_v21, 1 }
 0x1fc   :  { %v502_v25 = vadd.f32 %v501_v23, %v500_v21 }
 0x1fe   :  { %v513_v26 = vadd.f32 %v512_v24, %v502_v25 }
 0x200   :  { %515 = vst.msk [vmem:[%s880_s7] sm:$0x1] %vm514_vm3, %v513_v26 }

</bundles_post_ra>
